<compile_context>
chip_gen: v7x
topology: tpu7x:2x2x1
jax: 0.10.0
libtpu: 0.0.40
codegen_flags: <defaults>
</compile_context>

<pallas_src>
import math
import jax
import jax.numpy as jnp
from jax.experimental import pallas as pl
from jax.experimental.pallas import tpu as pltpu

LOG_STD_MAX = 2.0
LOG_STD_MIN = -20.0


def _softplus(x):
    # numerically stable softplus, matches F.softplus (beta=1) semantics
    return jnp.maximum(x, 0.0) + jnp.log1p(jnp.exp(-jnp.abs(x)))


def _make_head_kernel(act_limit, act_dim):
    act_limit = float(act_limit)
    A = int(act_dim)
    log_sqrt_2pi = 0.5 * math.log(2.0 * math.pi)
    log2 = math.log(2.0)

    def head_kernel(obs_ref, wcat_ref, eps_ref, act_ref, logp_ref):
        obs = obs_ref[...]                                   # (TB, D) f32
        eps = eps_ref[...]                                   # (TB, A) f32

        # --- single fused MXU matmul: [mu | log_std] projections ---
        proj = jnp.dot(obs, wcat_ref[...], preferred_element_type=jnp.float32)
        mu = proj[:, :A]
        log_std = jnp.clip(proj[:, A:2 * A], LOG_STD_MIN, LOG_STD_MAX)
        std = jnp.exp(log_std)

        # rsample: mu + std * eps  (so (pi - mu) / std == eps exactly)
        pi = mu + std * eps

        # per-element:  Normal log_prob  - tanh-squash correction
        #   log N = -0.5*eps^2 - log_std - 0.5*log(2*pi)   (constant folded out)
        #   corr  =  2*(log 2 - pi - softplus(-2*pi))       (stable form, keep)
        corr = 2.0 * (log2 - pi - _softplus(-2.0 * pi))
        per_elem = -0.5 * eps * eps - log_std - corr

        # one cross-lane reduction, then the folded constant
        logp_sum = jnp.sum(per_elem, axis=-1, keepdims=True) - A * log_sqrt_2pi

        act_ref[...] = act_limit * jnp.tanh(pi)
        logp_ref[...] = logp_sum

    return head_kernel


def squashed_gaussian_head(obs, w_mu, w_log_std, eps, act_limit):
    """obs: (B, D); w_mu, w_log_std: (A, D) as in nn.Linear(bias=False); eps: (B, A)."""
    B, D = obs.shape
    A = w_mu.shape[0]

    obs = obs.astype(jnp.float32)
    # Fuse the two weight matrices into one (D, 2A) slab: [W_mu^T | W_log_std^T]
    w_cat = jnp.concatenate(
        [jnp.transpose(w_mu), jnp.transpose(w_log_std)], axis=1
    ).astype(jnp.float32)
    eps = eps.astype(jnp.float32)

    # Cap the batch tile so large batches pipeline / shard across cores;
    # tiny batches (like the test below) still run in a single grid step.
    TB = B if B <= 512 else 512
    grid = (pl.cdiv(B, TB),)

    kernel = _make_head_kernel(act_limit, A)

    cost = pl.CostEstimate(
        flops=2 * B * D * (2 * A),                 # one fused (B,D)x(D,2A) matmul
        transcendentals=4 * B * A,                 # exp, exp(softplus), log1p, tanh
        bytes_accessed=(B * D + D * 2 * A + B * A + B * A + B) * 4,
    )

    pi_action, logp_pi = pl.pallas_call(
        kernel,
        out_shape=(
            jax.ShapeDtypeStruct((B, A), jnp.float32),
            jax.ShapeDtypeStruct((B, 1), jnp.float32),
        ),
        grid_spec=pltpu.PrefetchScalarGridSpec(
            num_scalar_prefetch=0,
            grid=grid,
            in_specs=[
                pl.BlockSpec((TB, D), lambda i: (i, 0)),        # obs tile
                pl.BlockSpec((D, 2 * A), lambda i: (0, 0)),     # fused weights (full)
                pl.BlockSpec((TB, A), lambda i: (i, 0)),        # noise tile
            ],
            out_specs=[
                pl.BlockSpec((TB, A), lambda i: (i, 0)),
                pl.BlockSpec((TB, 1), lambda i: (i, 0)),
            ],
        ),
        compiler_params=pltpu.CompilerParams(
            dimension_semantics=("parallel",),
        ),
        cost_estimate=cost,
    )(obs, w_cat, eps)

    return pi_action, logp_pi[:, 0]  # logp_pi: (B,), matches .sum(-1)


if __name__ == "__main__":
    key = jax.random.PRNGKey(0)
    k_obs, k_wmu, k_wls, k_eps = jax.random.split(key, 4)

    batch, input_dim, act_dim = 8, 32, 8
    act_limit = 1.5

    obs = jax.random.normal(k_obs, (batch, input_dim), dtype=jnp.float32)
    # deterministic synthetic parameters (nn.Linear default-ish scale)
    bound = 1.0 / math.sqrt(input_dim)
    w_mu = jax.random.uniform(k_wmu, (act_dim, input_dim),
                              minval=-bound, maxval=bound, dtype=jnp.float32)
    w_log_std = jax.random.uniform(k_wls, (act_dim, input_dim),
                                   minval=-bound, maxval=bound, dtype=jnp.float32)
    eps = jax.random.normal(k_eps, (batch, act_dim), dtype=jnp.float32)

    pi_action, logp_pi = squashed_gaussian_head(obs, w_mu, w_log_std, eps, act_limit)
    jax.block_until_ready((pi_action, logp_pi))

    # pure-JAX reference of the exact same math (eps-based log_prob form,
    # analytically identical to Normal(mu, std).log_prob(pi))
    mu = obs @ w_mu.T
    log_std = jnp.clip(obs @ w_log_std.T, LOG_STD_MIN, LOG_STD_MAX)
    std = jnp.exp(log_std)
    pi = mu + std * eps
    logp_ref = jnp.sum(-0.5 * eps * eps - log_std
                       - 0.5 * math.log(2.0 * math.pi), axis=-1)
    logp_ref = logp_ref - jnp.sum(
        2.0 * (math.log(2.0) - pi - jax.nn.softplus(-2.0 * pi)), axis=-1)
    act_ref = act_limit * jnp.tanh(pi)

    assert jnp.allclose(pi_action, act_ref, atol=1e-5, rtol=1e-5)
    assert jnp.allclose(logp_pi, logp_ref, atol=1e-4, rtol=1e-4)

    print("KERNEL_OK")
</pallas_src>

<mosaic_0001>
module attributes {stable_mosaic.version = 11 : i64} {
  func.func @head_kernel(%arg0: i32, %arg1: memref<8x32xf32, #tpu.memory_space<vmem>>, %arg2: memref<32x16xf32, #tpu.memory_space<vmem>>, %arg3: memref<8x8xf32, #tpu.memory_space<vmem>>, %arg4: memref<8x8xf32, #tpu.memory_space<vmem>>, %arg5: memref<8x1xf32, #tpu.memory_space<vmem>>) attributes {dimension_semantics = [#tpu.dimension_semantics<parallel>], iteration_bounds = array<i64: 1>, scalar_prefetch = 0 : i64, scratch_operands = 0 : i64, tpu.core_type = #tpu.core_type<tc>, window_params = [{transform_indices = @transform_0, window_bounds = array<i64: 8, 32>}, {pipeline_mode = #tpu.pipeline_mode<synchronous>, transform_indices = @transform_1, window_bounds = array<i64: 32, 16>}, {transform_indices = @transform_2, window_bounds = array<i64: 8, 8>}, {transform_indices = @transform_3, window_bounds = array<i64: 8, 8>}, {transform_indices = @transform_4, window_bounds = array<i64: 8, 1>}]} {
    %c0 = arith.constant 0 : index
    %c0_0 = arith.constant 0 : index
    %0 = vector.load %arg1[%c0, %c0_0] : memref<8x32xf32, #tpu.memory_space<vmem>>, vector<8x32xf32>
    %c0_1 = arith.constant 0 : index
    %c0_2 = arith.constant 0 : index
    %1 = vector.load %arg3[%c0_1, %c0_2] : memref<8x8xf32, #tpu.memory_space<vmem>>, vector<8x8xf32>
    %c0_3 = arith.constant 0 : index
    %c0_4 = arith.constant 0 : index
    %2 = vector.load %arg2[%c0_3, %c0_4] : memref<32x16xf32, #tpu.memory_space<vmem>>, vector<32x16xf32>
    %cst = arith.constant dense<0.000000e+00> : vector<8x16xf32>
    %3 = tpu.matmul %0, %2, %cst {dimension_numbers = #tpu.dot_dimension_numbers<[1], [0], [0], [1], [0, 0, 1, 1], [], []>} : vector<8x32xf32>, vector<32x16xf32>, vector<8x16xf32> -> vector<8x16xf32>
    %4 = vector.extract_strided_slice %3 {offsets = [0, 0], sizes = [8, 8], strides = [1, 1]} : vector<8x16xf32> to vector<8x8xf32>
    %5 = vector.extract_strided_slice %3 {offsets = [0, 8], sizes = [8, 8], strides = [1, 1]} : vector<8x16xf32> to vector<8x8xf32>
    %cst_5 = arith.constant -2.000000e+01 : f32
    %cst_6 = arith.constant 2.000000e+00 : f32
    %6 = vector.broadcast %cst_5 : f32 to vector<8x8xf32>
    %7 = arith.maximumf %6, %5 : vector<8x8xf32>
    %8 = vector.broadcast %cst_6 : f32 to vector<8x8xf32>
    %9 = arith.minimumf %8, %7 : vector<8x8xf32>
    %10 = math.exp %9 : vector<8x8xf32>
    %11 = arith.mulf %10, %1 : vector<8x8xf32>
    %12 = arith.addf %4, %11 : vector<8x8xf32>
    %cst_7 = arith.constant 0.693147182 : f32
    %13 = vector.broadcast %cst_7 : f32 to vector<8x8xf32>
    %14 = arith.subf %13, %12 : vector<8x8xf32>
    %cst_8 = arith.constant -2.000000e+00 : f32
    %15 = vector.broadcast %cst_8 : f32 to vector<8x8xf32>
    %16 = arith.mulf %15, %12 : vector<8x8xf32>
    %cst_9 = arith.constant 0.000000e+00 : f32
    %17 = vector.broadcast %cst_9 : f32 to vector<8x8xf32>
    %18 = arith.maximumf %16, %17 : vector<8x8xf32>
    %19 = math.absf %16 : vector<8x8xf32>
    %cst_10 = arith.constant 0.000000e+00 : f32
    %20 = vector.broadcast %cst_10 : f32 to vector<8x8xf32>
    %21 = arith.subf %20, %19 : vector<8x8xf32>
    %22 = math.exp %21 : vector<8x8xf32>
    %23 = math.log1p %22 : vector<8x8xf32>
    %24 = arith.addf %18, %23 : vector<8x8xf32>
    %25 = arith.subf %14, %24 : vector<8x8xf32>
    %cst_11 = arith.constant 2.000000e+00 : f32
    %26 = vector.broadcast %cst_11 : f32 to vector<8x8xf32>
    %27 = arith.mulf %26, %25 : vector<8x8xf32>
    %cst_12 = arith.constant -5.000000e-01 : f32
    %28 = vector.broadcast %cst_12 : f32 to vector<8x8xf32>
    %29 = arith.mulf %28, %1 : vector<8x8xf32>
    %30 = arith.mulf %29, %1 : vector<8x8xf32>
    %31 = arith.subf %30, %9 : vector<8x8xf32>
    %32 = arith.subf %31, %27 : vector<8x8xf32>
    %cst_13 = arith.constant dense<0.000000e+00> : vector<8xf32>
    %33 = vector.multi_reduction <add>, %32, %cst_13 [1] : vector<8x8xf32> to vector<8xf32>
    %34 = vector.shape_cast %33 : vector<8xf32> to vector<8x1xf32>
    %cst_14 = arith.constant 7.35150814 : f32
    %35 = vector.broadcast %cst_14 : f32 to vector<8x1xf32>
    %36 = arith.subf %34, %35 : vector<8x1xf32>
    %37 = math.tanh %12 : vector<8x8xf32>
    %cst_15 = arith.constant 1.500000e+00 : f32
    %38 = vector.broadcast %cst_15 : f32 to vector<8x8xf32>
    %39 = arith.mulf %38, %37 : vector<8x8xf32>
    %c0_16 = arith.constant 0 : index
    %c0_17 = arith.constant 0 : index
    %40 = vector.load %arg4[%c0_16, %c0_17] : memref<8x8xf32, #tpu.memory_space<vmem>>, vector<8x8xf32>
    tpu.vector_store %arg4[%c0_16, %c0_17], %39 {strides = array<i32>} : memref<8x8xf32, #tpu.memory_space<vmem>>, vector<8x8xf32>,
    %c0_18 = arith.constant 0 : index
    %c0_19 = arith.constant 0 : index
    %41 = vector.load %arg5[%c0_18, %c0_19] : memref<8x1xf32, #tpu.memory_space<vmem>>, vector<8x1xf32>
    tpu.vector_store %arg5[%c0_18, %c0_19], %36 {strides = array<i32>} : memref<8x1xf32, #tpu.memory_space<vmem>>, vector<8x1xf32>,
    return
  }
  func.func @transform_0(%arg0: i32) -> (i32, i32) {
    %c0_i32 = arith.constant 0 : i32
    %c0_i32_0 = arith.constant 0 : i32
    return %arg0, %c0_i32 : i32, i32
  }
  func.func @transform_1(%arg0: i32) -> (i32, i32) {
    %c0_i32 = arith.constant 0 : i32
    %c0_i32_0 = arith.constant 0 : i32
    %c0_i32_1 = arith.constant 0 : i32
    return %c0_i32, %c0_i32_0 : i32, i32
  }
  func.func @transform_2(%arg0: i32) -> (i32, i32) {
    %c0_i32 = arith.constant 0 : i32
    %c0_i32_0 = arith.constant 0 : i32
    return %arg0, %c0_i32 : i32, i32
  }
  func.func @transform_3(%arg0: i32) -> (i32, i32) {
    %c0_i32 = arith.constant 0 : i32
    %c0_i32_0 = arith.constant 0 : i32
    return %arg0, %c0_i32 : i32, i32
  }
  func.func @transform_4(%arg0: i32) -> (i32, i32) {
    %c0_i32 = arith.constant 0 : i32
    %c0_i32_0 = arith.constant 0 : i32
    return %arg0, %c0_i32 : i32, i32
  }
}

</mosaic_0001>

<bundles_post_ra>
// kernel: tpu_custom_call.1
= control target key start
LH: loop header
LB: loop body
LE: loop exit
PB: predicated region body
PF: predicated region fallthrough
CT: control target
= control target key end

     0   :  { %v228_v3 = vmov 0.0|0.0   ;;  %vm229_vm0 = vmmov 0   ;;  %v230_v6 = vmov 0.0   ;;  %s231_s25 = smov 8   ;;  %s294_s0 = inlined_call_operand.vmem [shape: f32[8,32], index: 0, kind: input, shape index: {}]   ;;  %s295_s1 = inlined_call_operand.vmem [shape: f32[32,16], index: 1, kind: input, shape index: {}]   ;;  %s296_s2 = inlined_call_operand.vmem [shape: f32[8,8], index: 2, kind: input, shape index: {}]   ;;  %s297_s3 = inlined_call_operand.hbm [shape: f32[8,8], index: 3, kind: output, shape index: {0}]   ;;  %s298_s4 = inlined_call_operand.vmem [shape: f32[8,1], index: 4, kind: output, shape index: {1}]  }
   0x1   :  { %v19_v0 = vld [vmem:[%s295_s1] sm:$0xff]  ;;  %v20_v1 = vld [vmem:[%s295_s1 + $0x8] sm:$0xff]  ;;  %v21_v2 = vld [vmem:[%s295_s1 + $0x10] sm:$0xff]  ;;  %184 = vmatprep.subr.bf16.mxu0 %v228_v3  ;;  %181 = vmatprep.mubr.msk.f32.mxu0 %vm229_vm0, %v230_v6 }
   0x2   :  { %v185_v4 = vpack.c.bf16 %v20_v1, %v19_v0  ;;  %v22_v5 = vld [vmem:[%s295_s1 + $0x18] sm:$0xff]  ;;  %v18_v7 = vld [vmem:[%s296_s2] sm:$0xff] }
   0x3   :  { %102 = vrot.lane.b32.xlu0 %v18_v7, %s231_s25 }
   0x4   :  { %10 = vsyncpa [#allocation3], 0  ;;  %186 = vmatpush3.bf16.msra.mxu0 %v185_v4  ;;  %v188_v8 = vpack.c.bf16 %v22_v5, %v21_v2  ;;  %v17_v9 = vld [vmem:[%s294_s0] sm:$0xff]  ;;  %vm23_vm1 = vcmask 261120   ;;  %s232_s1 = smov 120   ;;  %vm138_vm2 = vcmask 64512  }
   0x5   :  { %187 = vmatprep.subr.bf16.mxu0 %v228_v3  ;;  %v130_v32 = vmul.f32 -0.5, %v18_v7  ;;  %s233_s0 = smov [#allocation2]  }
   0x6   :  { %s154_s2 = sshll.u32 %s233_s0, 4  ;;  %s155_s2 = int_to_ptr.vmem [resolvable:$true] %s154_s2 }
   0x7   :  { %v131_v37 = vmul.f32 %v130_v32, %v18_v7  ;;  %s204_s28 = scalar_lea.vmem %s155_s2, 128  ;;  %p209_p1 = scmp.lt.s32.totalorder %s155_s2, %s155_s2 }
   0x8   :  { %189 = vmatpush3.bf16.msra.mxu0 %v188_v8  ;;  %p205_p0 = scmp.ne.s32.totalorder %s155_s2, %s204_s28  ;;  %p210_p2 = scmp.lt.s32.totalorder %s204_s28, %s204_s28 }
   0xa   :  { %p211_p3 = por %p210_p2, %p209_p1 }
   0xb   :  { %182 = vmatmul.mubr.msk.f32.vlgmr.msra.gmra.mrb[0].mxu0 %vm23_vm1, %v17_v9 }
   0xc   :  { %p212_p4 = pnand %p211_p3, %p205_p0 }
  0x75   :  { %v103_v15 = vpop.permute.xlu0 %102 }
  0xde   :  { %v93_v10 = vpop.f32.mrb[0].mxu0 }
  0xdf   :  { %v97_v11 = vmax.f32 %v93_v10, -20.0  ;;  %v183_v12 = vpop.f32.mrb[1].mxu0 }
  0xe1   :  { %v98_v13 = vmin.f32 %v97_v11, 2.0 }
  0xe3   :  { %133 = vrot.lane.b32.xlu1 %v98_v13, %s232_s1  ;;  %v99_v14 = vmul.f32 1.442695, %v98_v13 }
  0xe5   :  { %196 = vpow2.f32 %v99_v14 }
  0xef   :  { %v197_v16 = vpop.eup %196 }
  0xf0   :  { %v105_v17 = vmul.f32 %v197_v16, %v103_v15 }
  0xf2   :  { %107 = vrot.lane.b32.xlu0 %v105_v17, %s232_s1 }
 0x155   :  { %v134_v40 = vpop.permute.xlu1 %133 }
 0x156   :  { %v136_v42 = vsub.f32 %v131_v37, %v134_v40 }
 0x164   :  { %v108_v18 = vpop.permute.xlu0 %107 }
 0x165   :  { %v110_v19 = vadd.f32 %v108_v18, %v93_v10 }
 0x167   :  { %v112_v20 = vmul.f32 -2.0, %v110_v19  ;;  %198 = vtanh.f32 %v110_v19  ;;  %v111_v38 = vsub.f32 0.6931472, %v110_v19 }
 0x169   :  { %v114_v21 = vand.u32 2147483647, %v112_v20  ;;  %v113_v35 = vmax.f32 %v112_v20, 0.0 }
 0x16b   :  { %v115_v22 = vsub.f32 0.0, %v114_v21 }
 0x16d   :  { %v116_v23 = vmul.f32 1.442695, %v115_v22 }
 0x16f   :  { %200 = vpow2.f32 %v116_v23 }
 0x171   :  { %v199_v24 = vpop.eup %198 }
 0x172   :  { %v144_v25 = vmul.f32 1.5, %v199_v24 }
 0x174   :  { %145 = vst.msk [vmem:[#allocation2] sm:$0xff] %vm138_vm2, %v144_v25 }
 0x179   :  { %v201_v26 = vpop.eup %200 }
 0x17a   :  { %v118_v27 = vadd.f32 1.0, %v201_v26  ;;  %v121_v28 = vmul.f32 -0.5, %v201_v26  ;;  %v124_v30 = vand.u32 2147483647, %v201_v26 }
 0x17c   :  { %202 = vlog2.f32 %v118_v27  ;;  %v122_v29 = vadd.f32 1.0, %v121_v28  ;;  %vm125_vm3 = vcmp.lt.f32.partialorder %v124_v30, 0.0004427343 }
 0x17e   :  { %v123_v34 = vmul.f32 %v201_v26, %v122_v29 }
 0x186   :  { %v203_v31 = vpop.eup %202 }
 0x187   :  { %v120_v33 = vmul.f32 0.6931472, %v203_v31 }
 0x189   :  { %v126_v36 = vsel %vm125_vm3, %v123_v34, %v120_v33 }
 0x18a   :  { %v127_v39 = vadd.f32 %v126_v36, %v113_v35 }
 0x18c   :  { %v128_v41 = vsub.f32 %v111_v38, %v127_v39 }
 0x18e   :  { %v129_v43 = vmul.f32 2.0, %v128_v41 }
 0x190   :  { %v137_v44 = vsub.f32 %v136_v42, %v129_v43 }
 0x192   :  { %v139_v45 = vsel %vm138_vm2, %v137_v44, 0.0 }
 0x193   :  { %140 = vadd.xlane.f32.xlu1 %v139_v45 }
 0x194   :  { %215 = shalt.err (!%p212_p4)
}
 0x195   :  { %s216_s5 = scalar_lea.hbm %s297_s3, 128 }
 0x196   :  { %p217_p5 = scmp.ne.s32.totalorder %s297_s3, %s216_s5  ;;  %p220_p6 = scmp.lt.u32.totalorder %s216_s5, %s297_s3 }
 0x198   :  { %p222_p7 = pnand %p220_p6, %p217_p5 }
 0x19a   :  { %225 = shalt.err (!%p222_p7)
}
 0x19b   :  { %157 = dma.vmem_to_hbm [thread:$0]  %s155_s2, 128, %s297_s3, [#allocation3]   ;;  %vm146_vm4 = vcmask 7168  }
 0x220   :  { %v141_v46 = vpop.xlane.xlu1 %140 }
 0x221   :  { %v167_v47 = vadd.f32 -7.351508, %v141_v46 }
 0x223   :  { %147 = vst.msk [vmem:[%s298_s4] sm:$0xff] %vm146_vm4, %v167_v47 }
 0x224   :  { %226 = dma.done.wait [#allocation3], 128  }
 0x225   :  { %227 = vsyncadd [#allocation3], 4294967168 }
 0x226   :  { %165 = vsyncpa [#allocation3], 1 }

</bundles_post_ra>
